<compile_context>
chip_gen: v5e
topology: v5e:2x2
jax: 0.10.0
libtpu: 0.0.40
codegen_flags: <defaults>
</compile_context>

<pallas_src>
import jax
import jax.numpy as jnp
from jax.experimental import pallas as pl
from jax.experimental.pallas import tpu as pltpu


def _round_up(x, m):
    return (x + m - 1) // m * m


# ----------------------------- kernels --------------------------------------

def _linear_single_k_kernel(x_ref, w_ref, b_ref, o_ref):
    # x_ref: (tm, K)  w_ref: (K, tn)  b_ref: (1, tn) f32  o_ref: (tm, tn)
    # Entire K reduction in one grid step: no VMEM accumulator traffic.
    acc = jnp.dot(x_ref[...], w_ref[...], preferred_element_type=jnp.float32)
    o_ref[...] = (acc + b_ref[...]).astype(o_ref.dtype)


def _linear_multi_k_kernel(x_ref, w_ref, b_ref, o_ref, acc_ref):
    # Used only when padded K does not fit a single tile.
    k = pl.program_id(2)

    @pl.when(k == 0)
    def _():
        acc_ref[...] = jnp.zeros_like(acc_ref)

    acc_ref[...] += jnp.dot(x_ref[...], w_ref[...],
                            preferred_element_type=jnp.float32)

    @pl.when(k == pl.num_programs(2) - 1)
    def _():
        o_ref[...] = (acc_ref[...] + b_ref[...]).astype(o_ref.dtype)


# ----------------------------- tiling helpers --------------------------------

_VMEM_WORKING_SET_TARGET = 32 << 20   # keep headroom on v7x's 64 MiB / TC
_VMEM_LIMIT_CAP = 48 << 20            # never request the whole v7x VMEM
_TK_SINGLE_MAX = 2048                 # padded K up to this stays one K tile
_TM_MAX = 512
_TN_MAX = 1024


def _pick_divisor_tile(padded, max_tile):
    """Largest multiple of 128 that divides `padded` and is <= max_tile."""
    best = 128
    t = 128
    while t <= min(padded, max_tile):
        if padded % t == 0:
            best = t
        t += 128
    return best


# ----------------------------- parameter prep (one-time) ---------------------

def prepare_custom_embedding(weight, bias, *, compute_dtype=jnp.bfloat16,
                             tn_max=_TN_MAX, tk_max=1024,
                             tk_single_max=_TK_SINGLE_MAX):
    """One-time prep of nn.Linear params (hoisted out of the per-call hot path).

    weight: (model_dim, input_dim)  -- PyTorch layout
    bias:   (model_dim,)
    compute_dtype: operand dtype for the MXU (bf16 default; None = exact f32).
    """
    model_dim, input_dim = weight.shape
    opd_dtype = weight.dtype if compute_dtype is None else compute_dtype

    kp = _round_up(input_dim, 128)
    np_ = _round_up(model_dim, 128)

    tk = kp if kp <= tk_single_max else _pick_divisor_tile(kp, tk_max)
    tn = _pick_divisor_tile(np_, tn_max)

    # Cast + transpose to (K, N) + pad exactly once (static weight).
    w_kn = jnp.asarray(weight).T.astype(opd_dtype)
    w_kn = jnp.pad(w_kn, ((0, kp - input_dim), (0, np_ - model_dim)))
    b = jnp.asarray(bias).astype(jnp.float32).reshape(1, model_dim)
    b = jnp.pad(b, ((0, 0), (0, np_ - model_dim)))

    return dict(w=w_kn, b=b, model_dim=model_dim, input_dim=input_dim,
                kp=kp, np_=np_, tk=tk, tn=tn, opd_dtype=opd_dtype)


# ----------------------------- forward ---------------------------------------

def custom_embedding_apply(params, x, *, tm_max=_TM_MAX):
    """y = x @ weight.T + bias  (nn.Linear.forward semantics). x: (..., input_dim)."""
    *lead, input_dim = x.shape
    assert input_dim == params["input_dim"]
    model_dim = params["model_dim"]
    kp, np_, tk, tn = params["kp"], params["np_"], params["tk"], params["tn"]
    w, b = params["w"], params["b"]
    opd_dtype = params["opd_dtype"]
    out_dtype = x.dtype

    m = 1
    for d in lead:
        m *= d
    m = max(m, 1)

    opd_bytes = jnp.dtype(opd_dtype).itemsize
    out_bytes = jnp.dtype(out_dtype).itemsize
    single_k = (tk == kp)

    # Sublane alignment: 16 rows for packed (bf16) operands, 8 for f32.
    align_m = 8 if opd_bytes >= 4 else 16
    tm = min(tm_max, _round_up(m, align_m))

    def vmem_est(tm_):
        est = 2 * (tm_ * tk + tk * tn) * opd_bytes       # double-buffered x, w
        est += 2 * 8 * tn * 4                            # bias (sublane-padded)
        est += 2 * tm_ * tn * out_bytes                  # output double buffer
        if not single_k:
            est += tm_ * tn * 4                          # resident f32 acc
        return est

    while vmem_est(tm) > _VMEM_WORKING_SET_TARGET and tm > align_m:
        tm = max(align_m, tm // 2)

    # v7x has 2 TensorCores per chip: expose >= 2 parallel grid blocks.
    mp = _round_up(m, tm)
    while (mp // tm) * (np_ // tn) < 2 and tm > align_m:
        tm = max(align_m, tm // 2)
        mp = _round_up(m, tm)

    x2d = x.reshape(m, input_dim).astype(opd_dtype)
    if (mp, kp) != (m, input_dim):
        x2d = jnp.pad(x2d, ((0, mp - m), (0, kp - input_dim)))

    vmem_limit = min(max(int(vmem_est(tm) * 1.5), 16 << 20), _VMEM_LIMIT_CAP)

    # TODO(synk): if profiling on v7x shows an exposed x-tile DMA, add
    # pipeline_mode=pl.Buffered(3) to the x BlockSpec.
    if single_k:
        grid = (mp // tm, np_ // tn)
        out2d = pl.pallas_call(
            _linear_single_k_kernel,
            out_shape=jax.ShapeDtypeStruct((mp, np_), out_dtype),
            grid_spec=pltpu.PrefetchScalarGridSpec(
                num_scalar_prefetch=0,
                grid=grid,
                in_specs=[
                    pl.BlockSpec((tm, kp), lambda i, j: (i, 0)),   # x
                    pl.BlockSpec((kp, tn), lambda i, j: (0, j)),   # weight (K,N)
                    pl.BlockSpec((1, tn), lambda i, j: (0, j)),    # bias (f32)
                ],
                out_specs=pl.BlockSpec((tm, tn), lambda i, j: (i, j)),
            ),
            compiler_params=pltpu.CompilerParams(
                dimension_semantics=("parallel", "parallel"),
                vmem_limit_bytes=vmem_limit,
            ),
        )(x2d, w, b)
    else:
        grid = (mp // tm, np_ // tn, kp // tk)
        out2d = pl.pallas_call(
            _linear_multi_k_kernel,
            out_shape=jax.ShapeDtypeStruct((mp, np_), out_dtype),
            grid_spec=pltpu.PrefetchScalarGridSpec(
                num_scalar_prefetch=0,
                grid=grid,
                in_specs=[
                    pl.BlockSpec((tm, tk), lambda i, j, k: (i, k)),  # x
                    pl.BlockSpec((tk, tn), lambda i, j, k: (k, j)),  # weight (K,N)
                    pl.BlockSpec((1, tn), lambda i, j, k: (0, j)),   # bias (f32)
                ],
                out_specs=pl.BlockSpec((tm, tn), lambda i, j, k: (i, j)),
                scratch_shapes=[pltpu.VMEM((tm, tn), jnp.float32)],
            ),
            compiler_params=pltpu.CompilerParams(
                dimension_semantics=("parallel", "parallel", "arbitrary"),
                vmem_limit_bytes=vmem_limit,
            ),
        )(x2d, w, b)

    out2d = out2d[:m, :model_dim]
    return out2d.reshape(*lead, model_dim)


def custom_embedding(x, weight, bias, *, compute_dtype=jnp.bfloat16):
    """Convenience one-shot wrapper (prep + apply). Prefer preparing once."""
    params = prepare_custom_embedding(weight, bias, compute_dtype=compute_dtype)
    return custom_embedding_apply(params, x)


# ----------------------------- demo / checks ---------------------------------

if __name__ == "__main__":
    batch, seq, input_dim, model_dim = 2, 8, 32, 64

    key = jax.random.PRNGKey(0)
    kx, kw, kb, kx2, kw2, kb2 = jax.random.split(key, 6)

    # PyTorch-style uniform(-1/sqrt(in), 1/sqrt(in)) init.
    bound = 1.0 / (input_dim ** 0.5)
    weight = jax.random.uniform(
        kw, (model_dim, input_dim), jnp.float32, minval=-bound, maxval=bound)
    bias = jax.random.uniform(
        kb, (model_dim,), jnp.float32, minval=-bound, maxval=bound)
    x = jax.random.normal(kx, (batch, seq, input_dim), jnp.float32)
    y_ref = x @ weight.T + bias

    # (1) Default bf16-operand path (f32 accumulation), params prepared once.
    params_bf16 = prepare_custom_embedding(weight, bias,
                                           compute_dtype=jnp.bfloat16)
    fwd_bf16 = jax.jit(lambda v: custom_embedding_apply(params_bf16, v))
    y_bf16 = jax.block_until_ready(fwd_bf16(x))
    assert y_bf16.shape == (batch, seq, model_dim)
    assert jnp.allclose(y_bf16, y_ref, atol=5e-2, rtol=5e-2)

    # (2) Exact f32 path (strict nn.Linear semantics).
    params_f32 = prepare_custom_embedding(weight, bias, compute_dtype=None)
    fwd_f32 = jax.jit(lambda v: custom_embedding_apply(params_f32, v))
    y_f32 = jax.block_until_ready(fwd_f32(x))
    assert jnp.allclose(y_f32, y_ref, atol=1e-5, rtol=1e-5)

    # (3) Exercise the multi-K accumulator path with a K that spans several
    #     128-wide tiles (forced by a small tk_max).
    in2 = 300
    bound2 = 1.0 / (in2 ** 0.5)
    weight2 = jax.random.uniform(
        kw2, (model_dim, in2), jnp.float32, minval=-bound2, maxval=bound2)
    bias2 = jax.random.uniform(
        kb2, (model_dim,), jnp.float32, minval=-bound2, maxval=bound2)
    x2 = jax.random.normal(kx2, (batch, seq, in2), jnp.float32)
    params_mk = prepare_custom_embedding(weight2, bias2,
                                         compute_dtype=jnp.bfloat16,
                                         tk_single_max=0, tk_max=128)
    y_mk = jax.block_until_ready(custom_embedding_apply(params_mk, x2))
    y2_ref = x2 @ weight2.T + bias2
    assert jnp.allclose(y_mk, y2_ref, atol=5e-2, rtol=5e-2)

    print("KERNEL_OK")
</pallas_src>

<mosaic_0001>
module attributes {stable_mosaic.version = 11 : i64} {
  func.func @_linear_single_k_kernel(%arg0: i32, %arg1: i32, %arg2: memref<16x128xbf16, #tpu.memory_space<vmem>>, %arg3: memref<128x128xbf16, #tpu.memory_space<vmem>>, %arg4: memref<1x128xf32, #tpu.memory_space<vmem>>, %arg5: memref<16x128xf32, #tpu.memory_space<vmem>>) attributes {dimension_semantics = [#tpu.dimension_semantics<parallel>, #tpu.dimension_semantics<parallel>], iteration_bounds = array<i64: 1, 1>, scalar_prefetch = 0 : i64, scratch_operands = 0 : i64, tpu.core_type = #tpu.core_type<tc>, window_params = [{transform_indices = @transform_0, window_bounds = array<i64: 16, 128>}, {transform_indices = @transform_1, window_bounds = array<i64: 128, 128>}, {transform_indices = @transform_2, window_bounds = array<i64: 1, 128>}, {transform_indices = @transform_3, window_bounds = array<i64: 16, 128>}]} {
    %c0 = arith.constant 0 : index
    %c0_0 = arith.constant 0 : index
    %0 = vector.load %arg2[%c0, %c0_0] : memref<16x128xbf16, #tpu.memory_space<vmem>>, vector<16x128xbf16>
    %c0_1 = arith.constant 0 : index
    %c0_2 = arith.constant 0 : index
    %1 = vector.load %arg3[%c0_1, %c0_2] : memref<128x128xbf16, #tpu.memory_space<vmem>>, vector<128x128xbf16>
    %cst = arith.constant dense<0.000000e+00> : vector<16x128xf32>
    %2 = tpu.matmul %0, %1, %cst {dimension_numbers = #tpu.dot_dimension_numbers<[1], [0], [0], [1], [0, 0, 1, 1], [], []>} : vector<16x128xbf16>, vector<128x128xbf16>, vector<16x128xf32> -> vector<16x128xf32>
    %c0_3 = arith.constant 0 : index
    %c0_4 = arith.constant 0 : index
    %3 = vector.load %arg4[%c0_3, %c0_4] : memref<1x128xf32, #tpu.memory_space<vmem>>, vector<1x128xf32>
    %4 = vector.broadcast %3 : vector<1x128xf32> to vector<16x128xf32>
    %5 = arith.addf %2, %4 : vector<16x128xf32>
    %c0_5 = arith.constant 0 : index
    %c0_6 = arith.constant 0 : index
    %6 = vector.load %arg5[%c0_5, %c0_6] : memref<16x128xf32, #tpu.memory_space<vmem>>, vector<16x128xf32>
    tpu.vector_store %arg5[%c0_5, %c0_6], %5 {strides = array<i32>} : memref<16x128xf32, #tpu.memory_space<vmem>>, vector<16x128xf32>,
    return
  }
  func.func @transform_0(%arg0: i32, %arg1: i32) -> (i32, i32) {
    %c0_i32 = arith.constant 0 : i32
    %c0_i32_0 = arith.constant 0 : i32
    return %arg0, %c0_i32 : i32, i32
  }
  func.func @transform_1(%arg0: i32, %arg1: i32) -> (i32, i32) {
    %c0_i32 = arith.constant 0 : i32
    %c0_i32_0 = arith.constant 0 : i32
    return %c0_i32, %arg1 : i32, i32
  }
  func.func @transform_2(%arg0: i32, %arg1: i32) -> (i32, i32) {
    %c0_i32 = arith.constant 0 : i32
    %c0_i32_0 = arith.constant 0 : i32
    return %c0_i32, %arg1 : i32, i32
  }
  func.func @transform_3(%arg0: i32, %arg1: i32) -> (i32, i32) {
    %c0_i32 = arith.constant 0 : i32
    return %arg0, %arg1 : i32, i32
  }
}

</mosaic_0001>

<bundles_post_ra>
// kernel: _lambda_.1
= control target key start
LH: loop header
LB: loop body
LE: loop exit
PB: predicated region body
PF: predicated region fallthrough
CT: control target
= control target key end

     0   :  { %8 = vsyncpa [#allocation3], 0  ;;  %s202_s15 = smov [#allocation2]   ;;  %s203_s17 = smov 64   ;;  %s240_s0 = inlined_call_operand.vmem [shape: bf16[16,128], index: 0, kind: input, shape index: {}]   ;;  %s241_s1 = inlined_call_operand.hbm [shape: bf16[128,128], index: 1, kind: input, shape index: {}]   ;;  %s242_s2 = inlined_call_operand.vmem [shape: f32[1,128], index: 2, kind: input, shape index: {}]   ;;  %s243_s3 = inlined_call_operand.vmem [shape: f32[16,128], index: 3, kind: output, shape index: {}]  }
   0x1   :  { %s15_s14 = sshll.u32 %s241_s1, 4  ;;  %s17_s16 = sshll.u32 %s202_s15, 4  ;;  %s16_s14 = int_to_ptr.hbm [resolvable:$true] %s15_s14  ;;  %s18_s16 = int_to_ptr.vmem [resolvable:$true] %s17_s16 }
   0x2   :  { %s204_s18 = smov 4  }
   0x3   :  { %23 = dma.hbm_to_vmem [thread:$0]  %s16_s14, 1024, %s18_s16, [#allocation3], %s203_s17, %s203_s17, %s204_s18  }
   0x4   :  { %200 = dma.done.wait [#allocation3], 1024  }
   0x5   :  { %201 = vsyncadd [#allocation3], 4294966272  ;;  %v171_v0 = vld [vmem:[#allocation2 + $0x38] sm:$0xff]  ;;  %v170_v1 = vld [vmem:[#allocation2 + $0x30] sm:$0xff] }
   0x6   :  { %106 = vmatpush.bf16.msra.mxu0 %v171_v0  ;;  %v169_v2 = vld [vmem:[#allocation2 + $0x28] sm:$0xff]  ;;  %v168_v3 = vld [vmem:[#allocation2 + $0x20] sm:$0xff]  ;;  %v167_v4 = vld [vmem:[#allocation2 + $0x18] sm:$0xff] }
   0x7   :  { %v166_v5 = vld [vmem:[#allocation2 + $0x10] sm:$0xff]  ;;  %v165_v6 = vld [vmem:[#allocation2 + $0x8] sm:$0xff]  ;;  %v164_v7 = vld [vmem:[#allocation2] sm:$0xff] }
   0x8   :  { %v163_v8 = vld [vmem:[%s240_s0] sm:$0xff] }
   0x9   :  { %v175_v9 = vld [vmem:[%s242_s2] ss:$0 sm:$0xff] }
   0xa   :  { %107 = vmatpush.bf16.msra.mxu0 %v170_v1 }
   0xe   :  { %108 = vmatpush.bf16.msra.mxu0 %v169_v2 }
  0x12   :  { %109 = vmatpush.bf16.msra.mxu0 %v168_v3 }
  0x16   :  { %110 = vmatpush.bf16.msra.mxu0 %v167_v4 }
  0x1a   :  { %111 = vmatpush.bf16.msra.mxu0 %v166_v5 }
  0x1e   :  { %112 = vmatpush.bf16.msra.mxu0 %v165_v6 }
  0x22   :  { %113 = vmatpush.bf16.msra.mxu0 %v164_v7 }
  0x25   :  { %114 = vmatmul.bf16.vlgmr.msra.gmra.mxu0 %v163_v8 }
  0xa2   :  { %v115_v10 = vpop.f32.mrf.mxu0 }
  0xa3   :  { %v116_v11 = vadd.f32 %v175_v9, %v115_v10 }
  0xa5   :  { %120 = vst [vmem:[%s243_s3] sm:$0xff] %v116_v11 }
  0xaa   :  { %v117_v12 = vpop.f32.mrf.mxu0 }
  0xab   :  { %v118_v13 = vadd.f32 %v175_v9, %v117_v12 }
  0xad   :  { %121 = vst [vmem:[%s243_s3 + $0x8] sm:$0xff] %v118_v13 }
  0xae   :  { %126 = vsyncpa [#allocation3], 1 }

</bundles_post_ra>
